<compile_context>
chip_gen: v7x
topology: tpu7x:2x2x1
jax: 0.10.0
libtpu: 0.0.40
codegen_flags: <defaults>
</compile_context>

<pallas_src>
import jax
import jax.numpy as jnp
from jax.experimental import pallas as pl
from jax.experimental.pallas import tpu as pltpu


def _decoder_kernel(tok_ref,      # SMEM (2,) int32: [token_row // 8, token_row % 8]
                    emb_ref,      # (8, H) f32   : 8-row embedding block holding the token
                    h_ref,        # (1, H) f32   : previous hidden state
                    wrnn_ref,     # (2H, H) bf16 : fused [W_ih^T ; W_hh^T]
                    brnn_ref,     # (1, H) f32   : fused b_ih + b_hh
                    wout_ref,     # (H, tn) bf16 : output-projection tile
                    bout_ref,     # (1, tn) f32  : output bias tile
                    logits_ref,   # out (1, tn) f32 : raw logits tile
                    lse_ref,      # out (1, 1) f32  : logsumexp over all of V
                    hout_ref,     # out (1, H) f32  : new hidden state
                    h_sc,         # VMEM (1, H) f32 : h_new carried across V tiles
                    m_sc,         # VMEM (1, 1) f32 : running max
                    s_sc):        # VMEM (1, 1) f32 : running sum(exp)
    j = pl.program_id(0)
    nt = pl.num_programs(0)
    H = h_ref.shape[-1]

    # --- once, on the first V tile: embedding lookup + ReLU + one RNN step ---
    @pl.when(j == 0)
    def _():
        r = tok_ref[1]                                         # row of token inside 8-row block
        x = jnp.maximum(emb_ref[pl.ds(r, 1), :], 0.0)          # (1, H) f32, relu(embed)
        x_bf = x.astype(jnp.bfloat16)
        h_bf = h_ref[...].astype(jnp.bfloat16)
        pre = (jnp.dot(x_bf, wrnn_ref[pl.ds(0, H), :], preferred_element_type=jnp.float32)
               + jnp.dot(h_bf, wrnn_ref[pl.ds(H, H), :], preferred_element_type=jnp.float32)
               + brnn_ref[...])                                # (1, H) f32
        h_new = jnp.tanh(pre)
        h_sc[...] = h_new
        hout_ref[...] = h_new
        m_sc[...] = jnp.full((1, 1), -jnp.inf, jnp.float32)
        s_sc[...] = jnp.zeros((1, 1), jnp.float32)

    # --- every V tile: output projection + online logsumexp accumulation ---
    hb = h_sc[...].astype(jnp.bfloat16)
    logits = (jnp.dot(hb, wout_ref[...], preferred_element_type=jnp.float32)
              + bout_ref[...])                                 # (1, tn) f32
    logits_ref[...] = logits                                   # lane-dense tile store

    m_old = m_sc[...]
    m_new = jnp.maximum(m_old, jnp.max(logits, axis=-1, keepdims=True))
    s_sc[...] = (s_sc[...] * jnp.exp(m_old - m_new)
                 + jnp.sum(jnp.exp(logits - m_new), axis=-1, keepdims=True))
    m_sc[...] = m_new

    @pl.when(j == nt - 1)
    def _():
        lse_ref[...] = m_sc[...] + jnp.log(s_sc[...])          # (1, 1)


def decoder_rnn_forward(token, hidden, params, *, v_tile=512):
    """token: int32 (1, 1); hidden: f32 (1, 1, H).
    Returns (log_probs (1, V), hidden (1, 1, H))."""
    emb = params["embedding"]      # (V, H) f32
    w_rnn = params["w_rnn"]        # (2H, H) bf16
    b_rnn = params["b_rnn"]        # (1, H) f32
    w_out = params["w_out"]        # (H, V) bf16
    b_out = params["b_out"]        # (1, V) f32
    V, H = emb.shape
    assert H % 128 == 0 and V % 8 == 0, "pad H to 128 and V to 8 for lane/sublane alignment"
    tn = min(v_tile, V)
    assert V % tn == 0 and tn % 128 == 0
    nt = V // tn

    tok = jnp.clip(token.reshape(()), 0, V - 1).astype(jnp.int32)        # bounds-safe gather
    tok_meta = jnp.stack([tok // 8, tok % 8]).astype(jnp.int32)          # (block, row-in-block)
    h_in = hidden.reshape((1, H)).astype(jnp.float32)

    def resident(shape):
        # same block index for every grid step -> DMA'd once, stays in VMEM
        return pl.BlockSpec(shape, lambda j, tm: tuple(0 for _ in shape))

    grid_spec = pltpu.PrefetchScalarGridSpec(
        num_scalar_prefetch=1,
        grid=(nt,),
        in_specs=[
            pl.BlockSpec((8, H), lambda j, tm: (tm[0], 0)),   # embedding: only the token's block
            resident((1, H)),                                 # previous hidden
            resident((2 * H, H)),                             # fused RNN weight (bf16)
            resident((1, H)),                                 # fused RNN bias
            pl.BlockSpec((H, tn), lambda j, tm: (0, j)),      # W_out tile (bf16, pipelined)
            pl.BlockSpec((1, tn), lambda j, tm: (0, j)),      # b_out tile
        ],
        out_specs=(
            pl.BlockSpec((1, tn), lambda j, tm: (0, j)),      # raw logits tile (lane-dense)
            resident((1, 1)),                                 # logsumexp
            resident((1, H)),                                 # new hidden
        ),
        scratch_shapes=[
            pltpu.VMEM((1, H), jnp.float32),                  # h_new carried across V tiles
            pltpu.VMEM((1, 1), jnp.float32),                  # running max
            pltpu.VMEM((1, 1), jnp.float32),                  # running sum(exp)
        ],
    )

    logits, lse, h_out = pl.pallas_call(
        _decoder_kernel,
        out_shape=(jax.ShapeDtypeStruct((1, V), jnp.float32),
                   jax.ShapeDtypeStruct((1, 1), jnp.float32),
                   jax.ShapeDtypeStruct((1, H), jnp.float32)),
        grid_spec=grid_spec,
        compiler_params=pltpu.CompilerParams(
            dimension_semantics=("arbitrary",)),              # lse/hidden scratch carried across tiles
    )(tok_meta, emb, h_in, w_rnn, b_rnn, w_out, b_out)

    logp = logits - lse   # finish log_softmax (lse computed in-kernel; single broadcast subtract)
    return logp, h_out.reshape(1, 1, H)


def init_params(key, hidden_size, output_size):
    """Synthetic parameters matching nn.Embedding / nn.RNN / nn.Linear shapes.
    RNN / Linear weights are pre-transposed to (in_features, out_features);
    W_ih/W_hh (and their biases) are fused; streaming weights are bf16."""
    ks = jax.random.split(key, 7)
    scale = 1.0 / jnp.sqrt(hidden_size)
    emb = jax.random.normal(ks[0], (output_size, hidden_size), jnp.float32)
    w_ih = jax.random.uniform(ks[1], (hidden_size, hidden_size), jnp.float32, -scale, scale)
    w_hh = jax.random.uniform(ks[2], (hidden_size, hidden_size), jnp.float32, -scale, scale)
    b_ih = jax.random.uniform(ks[3], (1, hidden_size), jnp.float32, -scale, scale)
    b_hh = jax.random.uniform(ks[4], (1, hidden_size), jnp.float32, -scale, scale)
    w_out = jax.random.uniform(ks[5], (hidden_size, output_size), jnp.float32, -scale, scale)
    b_out = jax.random.uniform(ks[6], (1, output_size), jnp.float32, -scale, scale)
    return dict(
        embedding=emb,                                                     # f32 (row-gathered)
        w_rnn=jnp.concatenate([w_ih, w_hh], axis=0).astype(jnp.bfloat16),  # (2H, H) bf16
        b_rnn=(b_ih + b_hh).astype(jnp.float32),                           # (1, H) f32
        w_out=w_out.astype(jnp.bfloat16),                                  # (H, V) bf16
        b_out=b_out.astype(jnp.float32),                                   # (1, V) f32
    )


def reference_forward(token, hidden, params):
    """Pure-JAX reference mimicking the kernel's mixed-precision casts."""
    emb = params["embedding"]
    w_rnn = params["w_rnn"].astype(jnp.float32)
    w_out = params["w_out"].astype(jnp.float32)
    V, H = emb.shape
    tok = jnp.clip(token.reshape(()), 0, V - 1)
    x = jnp.maximum(emb[tok], 0.0).reshape(1, H)
    x = x.astype(jnp.bfloat16).astype(jnp.float32)
    h = hidden.reshape(1, H).astype(jnp.bfloat16).astype(jnp.float32)
    pre = x @ w_rnn[:H] + h @ w_rnn[H:] + params["b_rnn"]
    h_new = jnp.tanh(pre)
    hb = h_new.astype(jnp.bfloat16).astype(jnp.float32)
    logits = hb @ w_out + params["b_out"]
    logp = jax.nn.log_softmax(logits, axis=-1)
    return logp, h_new.reshape(1, 1, H)


if __name__ == "__main__":
    HIDDEN = 128     # lane-aligned (multiple of 128)
    OUTPUT = 2048    # vocabulary size, multiple of the 512-wide V tile

    key = jax.random.PRNGKey(0)
    kp, kt, kh = jax.random.split(key, 3)

    params = init_params(kp, HIDDEN, OUTPUT)
    token = jax.random.randint(kt, (1, 1), 0, OUTPUT, dtype=jnp.int32)   # decoder input token
    hidden = jax.random.normal(kh, (1, 1, HIDDEN), jnp.float32)          # initHidden()-like state

    logp, h_new = decoder_rnn_forward(token, hidden, params)
    jax.block_until_ready((logp, h_new))

    # sanity checks
    assert logp.shape == (1, OUTPUT) and h_new.shape == (1, 1, HIDDEN)
    assert jnp.allclose(jnp.sum(jnp.exp(logp)), 1.0, atol=1e-3)          # valid log_softmax row

    ref_logp, ref_h = reference_forward(token, hidden, params)
    assert jnp.allclose(logp, ref_logp, atol=2e-2), "log-probs mismatch vs reference"
    assert jnp.allclose(h_new, ref_h, atol=2e-2), "hidden mismatch vs reference"

    print("KERNEL_OK")
</pallas_src>

<mosaic_0001>
module attributes {stable_mosaic.version = 11 : i64} {
  func.func @_decoder_kernel(%arg0: i32, %arg1: memref<2xi32, #tpu.memory_space<smem>>, %arg2: memref<8x128xf32, #tpu.memory_space<vmem>>, %arg3: memref<1x128xf32, #tpu.memory_space<vmem>>, %arg4: memref<256x128xbf16, #tpu.memory_space<vmem>>, %arg5: memref<1x128xf32, #tpu.memory_space<vmem>>, %arg6: memref<128x512xbf16, #tpu.memory_space<vmem>>, %arg7: memref<1x512xf32, #tpu.memory_space<vmem>>, %arg8: memref<1x512xf32, #tpu.memory_space<vmem>>, %arg9: memref<1x1xf32, #tpu.memory_space<vmem>>, %arg10: memref<1x128xf32, #tpu.memory_space<vmem>>, %arg11: memref<1x128xf32, #tpu.memory_space<vmem>>, %arg12: memref<1x1xf32, #tpu.memory_space<vmem>>, %arg13: memref<1x1xf32, #tpu.memory_space<vmem>>) attributes {dimension_semantics = [#tpu.dimension_semantics<arbitrary>], iteration_bounds = array<i64: 4>, scalar_prefetch = 1 : i64, scratch_operands = 3 : i64, tpu.core_type = #tpu.core_type<tc>, window_params = [{transform_indices = @transform_0, window_bounds = array<i64: 8, 128>}, {pipeline_mode = #tpu.pipeline_mode<synchronous>, transform_indices = @transform_1, window_bounds = array<i64: 1, 128>}, {pipeline_mode = #tpu.pipeline_mode<synchronous>, transform_indices = @transform_2, window_bounds = array<i64: 256, 128>}, {pipeline_mode = #tpu.pipeline_mode<synchronous>, transform_indices = @transform_3, window_bounds = array<i64: 1, 128>}, {transform_indices = @transform_4, window_bounds = array<i64: 128, 512>}, {transform_indices = @transform_5, window_bounds = array<i64: 1, 512>}, {transform_indices = @transform_6, window_bounds = array<i64: 1, 512>}, {pipeline_mode = #tpu.pipeline_mode<synchronous>, transform_indices = @transform_7, window_bounds = array<i64: 1, 1>}, {pipeline_mode = #tpu.pipeline_mode<synchronous>, transform_indices = @transform_8, window_bounds = array<i64: 1, 128>}]} {
    %c0_i32 = arith.constant 0 : i32
    %0 = arith.cmpi eq, %arg0, %c0_i32 : i32
    %1 = arith.extui %0 : i1 to i32
    %c0_i32_0 = arith.constant 0 : i32
    %2 = arith.cmpi ne, %1, %c0_i32_0 : i32
    scf.if %2 {
      %c1 = arith.constant 1 : index
      %29 = memref.load %arg1[%c1] : memref<2xi32, #tpu.memory_space<smem>>
      %30 = arith.index_cast %29 : i32 to index
      %c0_19 = arith.constant 0 : index
      %31 = vector.load %arg2[%30, %c0_19] : memref<8x128xf32, #tpu.memory_space<vmem>>, vector<1x128xf32>
      %cst_20 = arith.constant 0.000000e+00 : f32
      %32 = vector.broadcast %cst_20 : f32 to vector<1x128xf32>
      %33 = arith.maximumf %31, %32 : vector<1x128xf32>
      %34 = arith.truncf %33 : vector<1x128xf32> to vector<1x128xbf16>
      %c0_21 = arith.constant 0 : index
      %c0_22 = arith.constant 0 : index
      %35 = vector.load %arg3[%c0_21, %c0_22] : memref<1x128xf32, #tpu.memory_space<vmem>>, vector<1x128xf32>
      %36 = arith.truncf %35 : vector<1x128xf32> to vector<1x128xbf16>
      %c0_23 = arith.constant 0 : index
      %c0_24 = arith.constant 0 : index
      %37 = vector.load %arg4[%c0_23, %c0_24] : memref<256x128xbf16, #tpu.memory_space<vmem>>, vector<128x128xbf16>
      %cst_25 = arith.constant dense<0.000000e+00> : vector<1x128xf32>
      %38 = tpu.matmul %34, %37, %cst_25 {dimension_numbers = #tpu.dot_dimension_numbers<[1], [0], [0], [1], [0, 0, 1, 1], [], []>} : vector<1x128xbf16>, vector<128x128xbf16>, vector<1x128xf32> -> vector<1x128xf32>
      %c128 = arith.constant 128 : index
      %c0_26 = arith.constant 0 : index
      %39 = vector.load %arg4[%c128, %c0_26] : memref<256x128xbf16, #tpu.memory_space<vmem>>, vector<128x128xbf16>
      %cst_27 = arith.constant dense<0.000000e+00> : vector<1x128xf32>
      %40 = tpu.matmul %36, %39, %cst_27 {dimension_numbers = #tpu.dot_dimension_numbers<[1], [0], [0], [1], [0, 0, 1, 1], [], []>} : vector<1x128xbf16>, vector<128x128xbf16>, vector<1x128xf32> -> vector<1x128xf32>
      %41 = arith.addf %38, %40 : vector<1x128xf32>
      %c0_28 = arith.constant 0 : index
      %c0_29 = arith.constant 0 : index
      %42 = vector.load %arg5[%c0_28, %c0_29] : memref<1x128xf32, #tpu.memory_space<vmem>>, vector<1x128xf32>
      %43 = arith.addf %41, %42 : vector<1x128xf32>
      %44 = math.tanh %43 : vector<1x128xf32>
      %c0_30 = arith.constant 0 : index
      %c0_31 = arith.constant 0 : index
      %45 = vector.load %arg11[%c0_30, %c0_31] : memref<1x128xf32, #tpu.memory_space<vmem>>, vector<1x128xf32>
      tpu.vector_store %arg11[%c0_30, %c0_31], %44 {strides = array<i32>} : memref<1x128xf32, #tpu.memory_space<vmem>>, vector<1x128xf32>,
      %c0_32 = arith.constant 0 : index
      %c0_33 = arith.constant 0 : index
      %46 = vector.load %arg10[%c0_32, %c0_33] : memref<1x128xf32, #tpu.memory_space<vmem>>, vector<1x128xf32>
      tpu.vector_store %arg10[%c0_32, %c0_33], %44 {strides = array<i32>} : memref<1x128xf32, #tpu.memory_space<vmem>>, vector<1x128xf32>,
      %cst_34 = arith.constant 0xFF800000 : f32
      %47 = vector.broadcast %cst_34 : f32 to vector<1x1xf32>
      %c0_35 = arith.constant 0 : index
      %c0_36 = arith.constant 0 : index
      %48 = vector.load %arg12[%c0_35, %c0_36] : memref<1x1xf32, #tpu.memory_space<vmem>>, vector<1x1xf32>
      tpu.vector_store %arg12[%c0_35, %c0_36], %47 {strides = array<i32>} : memref<1x1xf32, #tpu.memory_space<vmem>>, vector<1x1xf32>,
      %cst_37 = arith.constant 0.000000e+00 : f32
      %49 = vector.broadcast %cst_37 : f32 to vector<1x1xf32>
      %c0_38 = arith.constant 0 : index
      %c0_39 = arith.constant 0 : index
      %50 = vector.load %arg13[%c0_38, %c0_39] : memref<1x1xf32, #tpu.memory_space<vmem>>, vector<1x1xf32>
      tpu.vector_store %arg13[%c0_38, %c0_39], %49 {strides = array<i32>} : memref<1x1xf32, #tpu.memory_space<vmem>>, vector<1x1xf32>,
    } else {
    }
    %c0 = arith.constant 0 : index
    %c0_1 = arith.constant 0 : index
    %3 = vector.load %arg11[%c0, %c0_1] : memref<1x128xf32, #tpu.memory_space<vmem>>, vector<1x128xf32>
    %4 = arith.truncf %3 : vector<1x128xf32> to vector<1x128xbf16>
    %c0_2 = arith.constant 0 : index
    %c0_3 = arith.constant 0 : index
    %5 = vector.load %arg6[%c0_2, %c0_3] : memref<128x512xbf16, #tpu.memory_space<vmem>>, vector<128x512xbf16>
    %cst = arith.constant dense<0.000000e+00> : vector<1x512xf32>
    %6 = tpu.matmul %4, %5, %cst {dimension_numbers = #tpu.dot_dimension_numbers<[1], [0], [0], [1], [0, 0, 1, 1], [], []>} : vector<1x128xbf16>, vector<128x512xbf16>, vector<1x512xf32> -> vector<1x512xf32>
    %c0_4 = arith.constant 0 : index
    %c0_5 = arith.constant 0 : index
    %7 = vector.load %arg7[%c0_4, %c0_5] : memref<1x512xf32, #tpu.memory_space<vmem>>, vector<1x512xf32>
    %8 = arith.addf %6, %7 : vector<1x512xf32>
    %c0_6 = arith.constant 0 : index
    %c0_7 = arith.constant 0 : index
    %9 = vector.load %arg8[%c0_6, %c0_7] : memref<1x512xf32, #tpu.memory_space<vmem>>, vector<1x512xf32>
    tpu.vector_store %arg8[%c0_6, %c0_7], %8 {strides = array<i32>} : memref<1x512xf32, #tpu.memory_space<vmem>>, vector<1x512xf32>,
    %c0_8 = arith.constant 0 : index
    %c0_9 = arith.constant 0 : index
    %10 = vector.load %arg12[%c0_8, %c0_9] : memref<1x1xf32, #tpu.memory_space<vmem>>, vector<1x1xf32>
    %cst_10 = arith.constant dense<0xFF800000> : vector<1xf32>
    %11 = vector.multi_reduction <maximumf>, %8, %cst_10 [1] : vector<1x512xf32> to vector<1xf32>
    %12 = vector.shape_cast %11 : vector<1xf32> to vector<1x1xf32>
    %13 = arith.maximumf %10, %12 : vector<1x1xf32>
    %c0_11 = arith.constant 0 : index
    %c0_12 = arith.constant 0 : index
    %14 = vector.load %arg13[%c0_11, %c0_12] : memref<1x1xf32, #tpu.memory_space<vmem>>, vector<1x1xf32>
    %15 = arith.subf %10, %13 : vector<1x1xf32>
    %16 = math.exp %15 : vector<1x1xf32>
    %17 = arith.mulf %14, %16 : vector<1x1xf32>
    %18 = vector.broadcast %13 : vector<1x1xf32> to vector<1x512xf32>
    %19 = arith.subf %8, %18 : vector<1x512xf32>
    %20 = math.exp %19 : vector<1x512xf32>
    %cst_13 = arith.constant dense<0.000000e+00> : vector<1xf32>
    %21 = vector.multi_reduction <add>, %20, %cst_13 [1] : vector<1x512xf32> to vector<1xf32>
    %22 = vector.shape_cast %21 : vector<1xf32> to vector<1x1xf32>
    %23 = arith.addf %17, %22 : vector<1x1xf32>
    %c0_14 = arith.constant 0 : index
    %c0_15 = arith.constant 0 : index
    %24 = vector.load %arg13[%c0_14, %c0_15] : memref<1x1xf32, #tpu.memory_space<vmem>>, vector<1x1xf32>
    tpu.vector_store %arg13[%c0_14, %c0_15], %23 {strides = array<i32>} : memref<1x1xf32, #tpu.memory_space<vmem>>, vector<1x1xf32>,
    %c0_16 = arith.constant 0 : index
    %c0_17 = arith.constant 0 : index
    %25 = vector.load %arg12[%c0_16, %c0_17] : memref<1x1xf32, #tpu.memory_space<vmem>>, vector<1x1xf32>
    tpu.vector_store %arg12[%c0_16, %c0_17], %13 {strides = array<i32>} : memref<1x1xf32, #tpu.memory_space<vmem>>, vector<1x1xf32>,
    %c3_i32 = arith.constant 3 : i32
    %26 = arith.cmpi eq, %arg0, %c3_i32 : i32
    %27 = arith.extui %26 : i1 to i32
    %c0_i32_18 = arith.constant 0 : i32
    %28 = arith.cmpi ne, %27, %c0_i32_18 : i32
    scf.if %28 {
      %c0_19 = arith.constant 0 : index
      %c0_20 = arith.constant 0 : index
      %29 = vector.load %arg12[%c0_19, %c0_20] : memref<1x1xf32, #tpu.memory_space<vmem>>, vector<1x1xf32>
      %c0_21 = arith.constant 0 : index
      %c0_22 = arith.constant 0 : index
      %30 = vector.load %arg13[%c0_21, %c0_22] : memref<1x1xf32, #tpu.memory_space<vmem>>, vector<1x1xf32>
      %31 = math.log %30 : vector<1x1xf32>
      %32 = arith.addf %29, %31 : vector<1x1xf32>
      %c0_23 = arith.constant 0 : index
      %c0_24 = arith.constant 0 : index
      %33 = vector.load %arg9[%c0_23, %c0_24] : memref<1x1xf32, #tpu.memory_space<vmem>>, vector<1x1xf32>
      tpu.vector_store %arg9[%c0_23, %c0_24], %32 {strides = array<i32>} : memref<1x1xf32, #tpu.memory_space<vmem>>, vector<1x1xf32>,
    } else {
    }
    return
  }
  func.func @transform_0(%arg0: i32, %arg1: memref<2xi32, #tpu.memory_space<smem>>) -> (i32, i32) {
    %c0 = arith.constant 0 : index
    %0 = memref.load %arg1[%c0] : memref<2xi32, #tpu.memory_space<smem>>
    %c0_i32 = arith.constant 0 : i32
    %c0_i32_0 = arith.constant 0 : i32
    return %0, %c0_i32 : i32, i32
  }
  func.func @transform_1(%arg0: i32, %arg1: memref<2xi32, #tpu.memory_space<smem>>) -> (i32, i32) {
    %c0_i32 = arith.constant 0 : i32
    %c0_i32_0 = arith.constant 0 : i32
    %c0_i32_1 = arith.constant 0 : i32
    return %c0_i32, %c0_i32_0 : i32, i32
  }
  func.func @transform_2(%arg0: i32, %arg1: memref<2xi32, #tpu.memory_space<smem>>) -> (i32, i32) {
    %c0_i32 = arith.constant 0 : i32
    %c0_i32_0 = arith.constant 0 : i32
    %c0_i32_1 = arith.constant 0 : i32
    return %c0_i32, %c0_i32_0 : i32, i32
  }
  func.func @transform_3(%arg0: i32, %arg1: memref<2xi32, #tpu.memory_space<smem>>) -> (i32, i32) {
    %c0_i32 = arith.constant 0 : i32
    %c0_i32_0 = arith.constant 0 : i32
    %c0_i32_1 = arith.constant 0 : i32
    return %c0_i32, %c0_i32_0 : i32, i32
  }
  func.func @transform_4(%arg0: i32, %arg1: memref<2xi32, #tpu.memory_space<smem>>) -> (i32, i32) {
    %c0_i32 = arith.constant 0 : i32
    %c0_i32_0 = arith.constant 0 : i32
    return %c0_i32, %arg0 : i32, i32
  }
  func.func @transform_5(%arg0: i32, %arg1: memref<2xi32, #tpu.memory_space<smem>>) -> (i32, i32) {
    %c0_i32 = arith.constant 0 : i32
    %c0_i32_0 = arith.constant 0 : i32
    return %c0_i32, %arg0 : i32, i32
  }
  func.func @transform_6(%arg0: i32, %arg1: memref<2xi32, #tpu.memory_space<smem>>) -> (i32, i32) {
    %c0_i32 = arith.constant 0 : i32
    %c0_i32_0 = arith.constant 0 : i32
    return %c0_i32, %arg0 : i32, i32
  }
  func.func @transform_7(%arg0: i32, %arg1: memref<2xi32, #tpu.memory_space<smem>>) -> (i32, i32) {
    %c0_i32 = arith.constant 0 : i32
    %c0_i32_0 = arith.constant 0 : i32
    %c0_i32_1 = arith.constant 0 : i32
    return %c0_i32, %c0_i32_0 : i32, i32
  }
  func.func @transform_8(%arg0: i32, %arg1: memref<2xi32, #tpu.memory_space<smem>>) -> (i32, i32) {
    %c0_i32 = arith.constant 0 : i32
    %c0_i32_0 = arith.constant 0 : i32
    %c0_i32_1 = arith.constant 0 : i32
    return %c0_i32, %c0_i32_0 : i32, i32
  }
}

</mosaic_0001>

<bundles_post_ra>
// kernel: tpu_custom_call.1
= control target key start
LH: loop header
LB: loop body
LE: loop exit
PB: predicated region body
PF: predicated region fallthrough
CT: control target
= control target key end

     0   :  { %s2205_s0 = inlined_call_operand.hbm [shape: s32[2], index: 0, kind: input, shape index: {}]   ;;  %s2206_s1 = inlined_call_operand.hbm [shape: f32[2048,128], index: 1, kind: input, shape index: {}]   ;;  %s2207_s2 = inlined_call_operand.vmem [shape: f32[1,128], index: 2, kind: input, shape index: {}]   ;;  %s2208_s3 = inlined_call_operand.hbm [shape: bf16[256,128], index: 3, kind: input, shape index: {}]   ;;  %s2209_s4 = inlined_call_operand.vmem [shape: f32[1,128], index: 4, kind: input, shape index: {}]   ;;  %s2210_s5 = inlined_call_operand.hbm [shape: bf16[128,2048], index: 5, kind: input, shape index: {}]   ;;  %s2211_s6 = inlined_call_operand.vmem [shape: f32[1,2048], index: 6, kind: input, shape index: {}]   ;;  %s2212_s7 = inlined_call_operand.hbm [shape: f32[1,2048], index: 7, kind: output, shape index: {0}]   ;;  %s2213_s8 = inlined_call_operand.hbm [shape: f32[1,1], index: 8, kind: output, shape index: {1}]   ;;  %s2214_s9 = inlined_call_operand.hbm [shape: f32[1,128], index: 9, kind: output, shape index: {2}]  }
   0x1   :  { %2231 = sst [smem:[#allocation28_spill]] %s2206_s1  ;;  %s1486_s11 = scalar_lea.hbm %s2205_s0, 16 }
   0x2   :  { %2232 = sst [smem:[#allocation29_spill]] %s2214_s9  ;;  %p1487_p0 = scmp.ne.s32.totalorder %s2205_s0, %s1486_s11 }
   0x3   :  { %p1490_p1 = scmp.lt.u32.totalorder %s1486_s11, %s2205_s0 }
   0x5   :  { %p1492_p2 = pnand %p1490_p1, %p1487_p0 }
   0x7   :  { %1495 = shalt.err (!%p1492_p2)  }
   0x8   :  { %s1738_s16 = smov [#allocation6]  }
   0x9   :  { %16 = dma.hbm_to_smem %s2205_s0, 16, %s1738_s16, [#allocation5] }
   0xa   :  { %1692 = dma.done.wait [#allocation5], 16 }
   0xb   :  { %1693 = vsyncadd [#allocation5], 4294967280 }
   0xc   :  { %18 = sfence }
   0xd   :  { %19 = vsyncpa [#allocation8], 0 }
   0xe   :  { %20 = vsyncpa [#allocation11], 0 }
   0xf   :  { %21 = vsyncpa [#allocation9], 0 }
  0x10   :  { %23 = vsyncpa [#allocation9 + $0x1], 0 }
  0x11   :  { %24 = vsyncpa [#allocation15], 0  ;;  %s1817_s19 = smov 0   ;;  %s1819_s20 = smov 0  }
  0x12   :  { %s1821_s21 = smov 0   ;;  %s1823_s22 = smov 0  }
  0x13   :  { %s1825_s23 = smov 0   ;;  %s1827_s24 = smov 0  }
  0x14 LB: > { %2233 = sst [smem:[#allocation23_spill]] %s1716_s19  ;;  %s1846_s0 = sadd.s32 4294967295, %s1736_s24   ;;  %s1736_s24 = sphi %s1827_s24, %s2271_s24   ;;  %s1732_s23 = sphi %s1825_s23, %s2200_s23   ;;  %s1728_s22 = sphi %s1823_s22, %s2273_s22   ;;  %s1724_s21 = sphi %s1821_s21, %s2276_s21   ;;  %s1720_s20 = sphi %s1819_s20, %s2275_s20   ;;  %s1716_s19 = sphi %s1817_s19, %s2274_s19  }
  0x15   : > { %2234 = sst [smem:[#allocation24_spill]] %s1732_s23  ;;  %s1162_s25 = sadd.s32 4294967294, %s1736_s24  }
  0x16   : > { %s1850_s26 = sadd.s32 1, %s1736_s24   ;;  %s34_s27 = sld [smem:[#allocation6]] }
  0x17   : > { %2235 = sst [smem:[#allocation25_spill]] %s1850_s26  ;;  %p52_p3 = scmp.ne.s32.totalorder %s1732_s23, %s1728_s22 }
  0x18   : > { %p2220_p4 = scmp.eq.s32.totalorder %s1846_s0, 0  ;;  %s125_s28 = ssub.s32 %s1736_s24, %s1850_s26 }
  0x19   : > { %p126_p5 = scmp.eq.s32.totalorder %s125_s28, 0  ;;  %s128_s29 = sadd.s32 1, %s1724_s21 }
  0x1a   : > { %p1859_p6 = por %p2220_p4, %p52_p3  ;;  %p135_p7 = scmp.ne.s32.totalorder %s1724_s21, %s1720_s20 }
  0x1b   : > { %s1866_s10 = scalar_select %p126_p5, %s1724_s21, %s128_s29  }
  0x1c   : > { %s2236_s30 = scalar_select %p1859_p6, 1, 0 }
  0x1d   : > { %2237 = sst [smem:[#allocation26_spill]] %s1866_s10  ;;  %p136_p8 = scmp.eq.s32.totalorder %s1736_s24, 0 }
  0x1e   : > { %p141_p9 = scmp.ne.s32.totalorder %s1720_s20, %s1716_s19  ;;  %p2215_p11 = scmp.eq.s32.totalorder %s1846_s0, 3 }
  0x1f   : > { %p1871_p10 = por %p136_p8, %p135_p7  ;;  %p197_p0 = scmp.eq.s32.totalorder %s1162_s25, 3 }
  0x20   : > { %p1878_p12 = por %p141_p9, %p2220_p4  ;;  %p1884_p13 = por %p2215_p11, %p135_p7 }
  0x21   : > { %p1163_p1 = scmp.ge.s32.totalorder %s1736_s24, 1  ;;  %p246_p2 = scmp.lt.s32.totalorder %s1736_s24, 5 }
  0x22   : > { %s2239_s12 = scalar_select %p1878_p12, 1, 0 }
  0x23   : > { %s2240_s13 = scalar_select %p1884_p13, 1, 0 }
  0x24   : > { %s1164_s14 = sshll.u32 %s34_s27, 7  ;;  %p1890_p3 = por %p197_p0, %p141_p9 }
  0x25   : > { %s2243_s1 = sld [smem:[#allocation28_spill]]  ;;  %p1899_p5 = pnand %p1163_p1, %p246_p2 }
  0x26   : > { %s2241_s15 = scalar_select %p1890_p3, 1, 0 }
  0x27   : > { %s2244_s22 = scalar_select %p1899_p5, 1, 0 }
  0x28   : > { %2242 = sst [smem:[#allocation27_spill]] %s2241_s15  ;;  %s1739_s25 = smov [#allocation7]  }
  0x29   : > { %s262_s28 = sshll.u32 %s1739_s25, 4  ;;  %p2216_p8 = pneg %p1899_p5  ;;  %s1906_s28 = int_to_ptr.vmem [resolvable:$true] %s262_s28 }
  0x2a   : > { %p1329_p9 = scmp.lt.s32.totalorder %s1736_s24, 4 }
  0x2b   : > { %s1897_s18 = scalar_lea.hbm %s2243_s1, %s1164_s14  ;;  %p1914_p0 = pnand %p2216_p8, %p1859_p6 }
  0x2c   : > { %p1920_p1 = pnand %p1329_p9, %p1871_p10  ;;  %s1740_s14 = smov [#allocation10]  }
  0x2d   : > { %s275_s16 = sshll.u32 %s1740_s14, 4  ;;  %s1496_s17 = scalar_lea.hbm %s1897_s18, 128  ;;  %s1924_s16 = int_to_ptr.vmem [resolvable:$true] %s275_s16 }
  0x2e   : > { %s2246_s29 = scalar_select %p1920_p1, 1, 0 }
  0x2f   : > { %p1497_p2 = scmp.ne.s32.totalorder %s1897_s18, %s1496_s17  ;;  %p1498_p11 = pneg %p1914_p0 }
  0x30   : > { %s1501_s23 = scalar_lea.hbm %s2243_s1, 32768  ;;  %p1502_p10 = scmp.lt.u32.totalorder %s1897_s18, %s2243_s1 }
  0x31   : > { %p1499_p7 = pnand %p1498_p11, %p1497_p2  ;;  %p1503_p9 = scmp.lt.u32.totalorder %s1501_s23, %s1496_s17 }
  0x32   : > { %p1505_p3 = scmp.lt.u32.totalorder %s1496_s17, %s1897_s18 }
  0x33   : > { %p1500_p8 = pneg %p1499_p7  ;;  %p1504_p4 = por %p1503_p9, %p1502_p10 }
  0x35   : > { %p1506_p13 = por %p1505_p3, %p1504_p4 }
  0x37   : > { %p1507_p12 = pnand %p1506_p13, %p1500_p8 }
  0x39   : > { %1510 = shalt.err (!%p1507_p12)
}
  0x3a   : > { %s1511_s14 = scalar_lea.vmem %s1906_s28, 128  ;;  %p1519_p1 = scmp.lt.s32.totalorder %s1906_s28, %s1906_s28 }
  0x3b   : > { %p1512_p7 = scmp.ne.s32.totalorder %s1906_s28, %s1511_s14  ;;  %p1520_p5 = scmp.lt.s32.totalorder %s1511_s14, %s1511_s14 }
  0x3d   : > { %p1514_p2 = pnand %p1512_p7, %p1498_p11  ;;  %p1521_p9 = por %p1520_p5, %p1519_p1 }
  0x3f   : > { %p1515_p6 = pneg %p1514_p2 }
  0x41   : > { %p1522_p10 = pnand %p1521_p9, %p1515_p6 }
  0x43   : > { %1525 = shalt.err (!%p1522_p10)
}
  0x44   : > { %1316 = dma.hbm_to_vmem [thread:$0]  (!%p1914_p0), %s1897_s18, 128, %s1906_s28, [#allocation8]  }
  0x45   : > { %p2247_p4 = scmp.eq.s32.totalorder %s1846_s0, 0  ;;  %p2248_p12 = scmp.ne.s32.totalorder %s2244_s22, 0 }
  0x46   : > { %s292_s26 = sand.u32 1, %s1736_s24   ;;  %s1526_s25 = scalar_lea.hbm %s2208_s3, 2048 }
  0x47   : > { %p2249_p13 = pneg %p2248_p12  ;;  %p1527_p6 = scmp.ne.s32.totalorder %s2208_s3, %s1526_s25 }
  0x48   : > { %p1533_p0 = scmp.lt.u32.totalorder %s1526_s25, %s2208_s3 }
  0x49   : > { %p1957_p3 = pnand %p2249_p13, %p2247_p4 }
  0x4b   : > { %p1528_p11 = pneg %p1957_p3 }
  0x4d   : > { %p1529_p5 = pnand %p1528_p11, %p1527_p6 }
  0x4f   : > { %p1530_p8 = pneg %p1529_p5 }
  0x51   : > { %p1535_p1 = pnand %p1533_p0, %p1530_p8 }
  0x53   : > { %1538 = shalt.err (!%p1535_p1)
}
  0x54   : > { %s1539_s14 = scalar_lea.vmem %s1924_s16, 2048  ;;  %p1547_p10 = scmp.lt.s32.totalorder %s1924_s16, %s1924_s16 }
  0x55   : > { %p1540_p7 = scmp.ne.s32.totalorder %s1924_s16, %s1539_s14  ;;  %p1548_p4 = scmp.lt.s32.totalorder %s1539_s14, %s1539_s14 }
  0x57   : > { %p1542_p2 = pnand %p1540_p7, %p1528_p11  ;;  %p1549_p13 = por %p1548_p4, %p1547_p10 }
  0x59   : > { %p1543_p9 = pneg %p1542_p2 }
  0x5b   : > { %p1550_p12 = pnand %p1549_p13, %p1543_p9 }
  0x5d   : > { %1553 = shalt.err (!%p1550_p12)
}
  0x5e   : > { %s1741_s10 = smov 64   ;;  %s1742_s17 = smov 4  }
  0x5f   : > { %1319 = dma.hbm_to_vmem [thread:$0]  (!%p1957_p3), %s2208_s3, 2048, %s1924_s16, [#allocation11], %s1741_s10, %s1741_s10, %s1742_s17  }
  0x60   : > { %s294_s11 = sand.u32 1, %s1724_s21   ;;  %s1235_s28 = sshll.u32 %s1736_s24, 8 }
  0x61   : > { %s1167_s18 = sshll.u32 %s294_s11, 8  ;;  %s1988_s15 = scalar_lea.hbm %s2210_s5, %s1235_s28 }
  0x62   : > { %s296_s19 = scalar_lea.vmem [#allocation12], %s1167_s18  ;;  %s1992_s23 = scalar_lea.sflag [#allocation8], %s292_s26 }
  0x63   : > { %s303_s9 = sshll.u32 %s296_s19, 4  ;;  %s1554_s25 = scalar_lea.hbm %s1988_s15, 4096  ;;  %s1990_s9 = int_to_ptr.vmem [resolvable:$true] %s303_s9 }
  0x64   : > { %p1555_p12 = scmp.ne.s32.totalorder %s1988_s15, %s1554_s25  ;;  %p2251_p3 = scmp.ne.s32.totalorder %s2246_s29, 0 }
  0x65   : > { %s1559_s10 = scalar_lea.hbm %s2210_s5, 16384  ;;  %p1560_p8 = scmp.lt.u32.totalorder %s1988_s15, %s2210_s5 }
  0x66   : > { %p1556_p6 = pneg %p2251_p3  ;;  %p1561_p0 = scmp.lt.u32.totalorder %s1559_s10, %s1554_s25 }
  0x67   : > { %p1563_p7 = scmp.lt.u32.totalorder %s1554_s25, %s1988_s15 }
  0x68   : > { %p1557_p11 = pnand %p1556_p6, %p1555_p12  ;;  %p1562_p1 = por %p1561_p0, %p1560_p8 }
  0x6a   : > { %p1558_p5 = pneg %p1557_p11  ;;  %p1564_p2 = por %p1563_p7, %p1562_p1 }
  0x6c   : > { %p1565_p9 = pnand %p1564_p2, %p1558_p5 }
  0x6e   : > { %1568 = shalt.err (!%p1565_p9)
}
  0x6f   : > { %s1569_s19 = scalar_lea.vmem %s1990_s9, 4096  ;;  %s1743_s26 = smov [#allocation12]  }
  0x70   : > { %p1570_p10 = scmp.ne.s32.totalorder %s1990_s9, %s1569_s19  ;;  %s1574_s11 = sshll.u32 %s1743_s26, 4  ;;  %s1575_s11 = int_to_ptr.vmem [resolvable:$false] %s1574_s11 }
  0x71   : > { %s1576_s18 = scalar_lea.vmem %s1575_s11, 8192  ;;  %p1577_p12 = scmp.lt.s32.totalorder %s1990_s9, %s1575_s11 }
  0x72   : > { %p1572_p4 = pnand %p1570_p10, %p1556_p6  ;;  %p1578_p11 = scmp.lt.s32.totalorder %s1576_s18, %s1569_s19 }
  0x74   : > { %p1573_p13 = pneg %p1572_p4  ;;  %p1579_p8 = por %p1578_p11, %p1577_p12 }
  0x76   : > { %p1580_p0 = pnand %p1579_p8, %p1573_p13 }
  0x78   : > { %1583 = shalt.err (!%p1580_p0)
}
  0x79   : > { %s1744_s28 = smov 1024   ;;  %s1745_s14 = smov 256  }
  0x7a   : > { %s1746_s25 = smov 16   ;;  %p2252_p6 = scmp.ne.s32.totalorder %s2244_s22, 0 }
  0x7b   : > { %1323 = dma.hbm_to_vmem [thread:$0]  (!%p2251_p3), %s1988_s15, 4096, %s1990_s9, %s1992_s23, %s1744_s28, %s1745_s14, %s1746_s25  }
  0x7c   : > { %323 = sbr.rel (%p2252_p6) target bundleno = 1206 (0x4b6), region = 44  ;;  %p2253_p5 = scmp.ne.s32.totalorder (!%p2252_p6), %s2236_s30, 0 }
  0x83   : > { %1695 = dma.done.wait (%p2253_p5), [#allocation8], 128  }
  0x84   : > { %1697 = vsyncadd (%p2253_p5), [#allocation8], 4294967168  ;;  %p2254_p1 = scmp.eq.s32.totalorder %s1846_s0, 0 }
  0x86   : > { %1699 = dma.done.wait (%p2254_p1), [#allocation11], 2048   ;;  %p2255_p7 = pmov %p2254_p1 }
  0x87   : > { %s333_s29 = sand.u32 1, %s1846_s0   ;;  %s2032_s9 = sand.u32 1, %s1720_s20  }
  0x88   : > { %1701 = vsyncadd (%p2255_p7), [#allocation11], 4294965248  ;;  %s1172_s15 = sshll.u32 %s2032_s9, 8  ;;  %s334_s22 = scalar_lea.sflag [#allocation8], %s333_s29 }
  0x89   : > { %s2035_s23 = scalar_lea.vmem [#allocation12], %s1172_s15  ;;  %p2256_p3 = scmp.ne.s32.totalorder %s2239_s12, 0 }
  0x8b   : > { %1703 = dma.done.wait (%p2256_p3), %s334_s22, 4096  }
  0x8c   : > { %1705 = vsyncadd (%p2256_p3), %s334_s22, 4294963200  ;;  %s1173_s30 = sshll.u32 %s2032_s9, 2  ;;  %s1174_s1 = sshll.u32 %s1846_s0, 2 }
  0x8d   : > { %p377_p2 = scmp.lt.s32.totalorder %s1174_s1, 15  ;;  %s2049_s27 = scalar_lea.vmem [#allocation13], %s1173_s30 }
  0x8e   : > { %p2257_p9 = scmp.ne.s32.totalorder %s1846_s0, 0 }
  0x8f   : > { %s2278_s1 = smov (!%p377_p2, %s1174_s1), 15  ;;  %vm607_vm0 = vcmask (!%p2257_p9), 0   ;;  %v1407_v0 = vld [vmem:[#allocation10 + $0x40] sm:$0xff] (!%p2257_p9)   ;;  %v1747_v1 = vmov (!%p2257_p9), 0.0   ;;  %v1748_v2 = vmov (!%p2257_p9), -inf   ;;  %v1409_v4 = vld [vmem:[#allocation10 + $0x48] sm:$0xff] (!%p2257_p9)  }
  0x90   : > { %s379_s17 = scalar_lea.vmem %s2211_s6, %s2278_s1  ;;  %386 = sbr.rel (%p2257_p9) target bundleno = 404 (0x194), region = 60  ;;  %1255 = vmatprep.subr.bf16.mxu0 (!%p2257_p9), %v1747_v1  ;;  %608 = vst.msk [vmem:[#allocation3] sm:$0x1] (!%p2257_p9), %vm607_vm0, %v1748_v2  ;;  %609 = vst.msk [vmem:[#allocation4] sm:$0x1] (!%p2257_p9), %vm607_vm0, %v1747_v1  ;;  %1275 = vmatprep.subr.bf16.mxu1 (!%p2257_p9), %v1747_v1  ;;  %v1408_v3 = vld [vmem:[#allocation10] sm:$0xff] (!%p2257_p9)  }
  0x91   : > { %1256 = vmatpush3.bf16.msra.mxu0 (!%p2257_p9), %v1407_v0  ;;  %vm1749_vm1 = vmmov (!%p2257_p9), 0   ;;  %1276 = vmatpush3.bf16.msra.mxu1 (!%p2257_p9), %v1408_v3  ;;  %v1410_v5 = vld [vmem:[#allocation10 + $0x8] sm:$0xff] (!%p2257_p9)   ;;  %v1411_v6 = vld [vmem:[#allocation10 + $0x50] sm:$0xff] (!%p2257_p9)   ;;  %v1413_v8 = vld [vmem:[#allocation10 + $0x58] sm:$0xff] (!%p2257_p9)   ;;  %s1176_s12 = sld [smem:[#allocation6 + $0x1]] (!%p2257_p9) }
  0x92   : > { %1257 = vmatprep.subr.bf16.mxu0 (!%p2257_p9), %v1747_v1  ;;  %1271 = vmatprep.mubr.msk.bf16.mxu0 (!%p2257_p9), %vm1749_vm1, %v1747_v1  ;;  %v1412_v7 = vld [vmem:[#allocation10 + $0x10] sm:$0xff] (!%p2257_p9)   ;;  %v1414_v9 = vld [vmem:[#allocation10 + $0x18] sm:$0xff] (!%p2257_p9)   ;;  %v1415_v10 = vld [vmem:[#allocation10 + $0x60] sm:$0xff] (!%p2257_p9)  }
  0x93   : > { %1291 = vmatprep.mubr.msk.bf16.mxu1 (!%p2257_p9), %vm1749_vm1, %v1747_v1  ;;  %1277 = vmatprep.subr.bf16.mxu1 (!%p2257_p9), %v1747_v1  ;;  %v1416_v11 = vld [vmem:[#allocation10 + $0x20] sm:$0xff] (!%p2257_p9)   ;;  %v1417_v12 = vld [vmem:[#allocation10 + $0x68] sm:$0xff] (!%p2257_p9)   ;;  %v1419_v14 = vld [vmem:[#allocation10 + $0x70] sm:$0xff] (!%p2257_p9)  }
  0x94   : > { %v1418_v13 = vld [vmem:[#allocation10 + $0x28] sm:$0xff] (!%p2257_p9)   ;;  %v1420_v15 = vld [vmem:[#allocation10 + $0x30] sm:$0xff] (!%p2257_p9)   ;;  %v1421_v17 = vld [vmem:[#allocation10 + $0x78] sm:$0xff] (!%p2257_p9)  }
  0x95   : > { %1258 = vmatpush3.bf16.msra.mxu0 (!%p2257_p9), %v1409_v4  ;;  %1278 = vmatpush3.bf16.msra.mxu1 (!%p2257_p9), %v1410_v5  ;;  %v392_v18 = vld [vmem:[%s2207_s2] sm:$0x1] (!%p2257_p9)  ;;  %v1422_v20 = vld [vmem:[#allocation10 + $0x38] sm:$0xff] (!%p2257_p9)  }
  0x96   : > { %1259 = vmatprep.subr.bf16.mxu0 (!%p2257_p9), %v1747_v1  ;;  %1279 = vmatprep.subr.bf16.mxu1 (!%p2257_p9), %v1747_v1  ;;  %v393_v21 = vpack.c.bf16 (!%p2257_p9), %v392_v18, %v392_v18  ;;  %v602_v26 = vld [vmem:[%s2209_s4] sm:$0x1] (!%p2257_p9) }
  0x97   : > { %s388_s19 = scalar_lea.vmem [#allocation7], %s1176_s12 }
  0x98   : > { %v389_v16 = vld [vmem:[%s388_s19] sm:$0x1] }
  0x99   : > { %1260 = vmatpush3.bf16.msra.mxu0 %v1411_v6  ;;  %1280 = vmatpush3.bf16.msra.mxu1 %v1412_v7  ;;  %v390_v19 = vmax.f32 %v389_v16, 0.0 }
  0x9a   : > { %1261 = vmatprep.subr.bf16.mxu0 %v1747_v1  ;;  %1281 = vmatprep.subr.bf16.mxu1 %v1747_v1 }
  0x9b   : > { %v391_v22 = vpack.c.bf16 %v390_v19, %v390_v19 }
  0x9d   : > { %1262 = vmatpush3.bf16.msra.mxu0 %v1413_v8  ;;  %1282 = vmatpush3.bf16.msra.mxu1 %v1414_v9 }
  0x9e   : > { %1263 = vmatprep.subr.bf16.mxu0 %v1747_v1  ;;  %1283 = vmatprep.subr.bf16.mxu1 %v1747_v1 }
  0xa1   : > { %1264 = vmatpush3.bf16.msra.mxu0 %v1415_v10  ;;  %1284 = vmatpush3.bf16.msra.mxu1 %v1416_v11 }
  0xa2   : > { %1265 = vmatprep.subr.bf16.mxu0 %v1747_v1  ;;  %1285 = vmatprep.subr.bf16.mxu1 %v1747_v1 }
  0xa5   : > { %1266 = vmatpush3.bf16.msra.mxu0 %v1417_v12  ;;  %1286 = vmatpush3.bf16.msra.mxu1 %v1418_v13 }
  0xa6   : > { %1267 = vmatprep.subr.bf16.mxu0 %v1747_v1  ;;  %1287 = vmatprep.subr.bf16.mxu1 %v1747_v1 }
  0xa9   : > { %1268 = vmatpush3.bf16.msra.mxu0 %v1419_v14  ;;  %1288 = vmatpush3.bf16.msra.mxu1 %v1420_v15 }
  0xaa   : > { %1269 = vmatprep.subr.bf16.mxu0 %v1747_v1  ;;  %1289 = vmatprep.subr.bf16.mxu1 %v1747_v1 }
  0xad   : > { %1270 = vmatpush3.bf16.msra.mxu0 %v1421_v17  ;;  %1290 = vmatpush3.bf16.msra.mxu1 %v1422_v20 }
  0xb0   : > { %1272 = vmatmul.mubr.bf16.vlgmr.msra.gmra.mrb[0].mxu0 %v393_v21  ;;  %1292 = vmatmul.mubr.bf16.vlgmr.msra.gmra.mrb[0].mxu1 %v391_v22 }
 0x183   : > { %v508_v23 = vpop.f32.mrb[0].mxu0  ;;  %v596_v25 = vpop.f32.mrb[0].mxu1 }
 0x184   : > { %v1273_v24 = vpop.f32.mrb[1].mxu0  ;;  %v597_v28 = vadd.f32 %v596_v25, %v508_v23  ;;  %v1293_v29 = vpop.f32.mrb[1].mxu1 }
 0x185   : > { %v511_v27 = vpop.f32.mrb[2].mxu0  ;;  %v599_v31 = vpop.f32.mrb[2].mxu1 }
 0x186   : > { %v1274_v30 = vpop.f32.mrb[3].mxu0  ;;  %v603_v32 = vadd.f32 %v602_v26, %v597_v28  ;;  %v1294_v33 = vpop.f32.mrb[3].mxu1 }
 0x188   : > { %1423 = vtanh.f32 %v603_v32 }
 0x192   : > { %v1424_v34 = vpop.eup %1423 }
 0x193   : > { %605 = vst [vmem:[#allocation2] sm:$0x1] %v1424_v34  ;;  %606 = vst [vmem:[#allocation16] sm:$0x1] %v1424_v34 }
 0x194 PF: > { %v1426_v35 = vld [vmem:[%s2035_s23 + $0x4] ss:$16 sps:$4 sm:$0xff]   ;;  %v1428_v36 = vld [vmem:[%s2035_s23 + $0xc] ss:$16 sps:$4 sm:$0xff]   ;;  %v1750_v37 = vmov 0   ;;  %v806_v6 = vlaneseq  ;;  %vm943_vm2 = vcmask 1040384  }
 0x195   : > { %858 = vmatprep.mubr.bf16.mxu0 %v1750_v37  ;;  %899 = vmatprep.mubr.bf16.mxu1 %v1750_v37  ;;  %v1430_v38 = vld [vmem:[%s2035_s23] ss:$16 sps:$4 sm:$0xff]   ;;  %v1431_v39 = vld [vmem:[%s2035_s23 + $0x8] ss:$16 sps:$4 sm:$0xff]   ;;  %v1432_v40 = vld [vmem:[%s2035_s23 + $0x24] ss:$16 sps:$4 sm:$0xff]  }
 0x196   : > { %826 = vmatprep.subr.bf16.mxu0 %v1426_v35  ;;  %1425 = vset.pattern.permute.xlu0 %v1750_v37  ;;  %v1434_v41 = vld [vmem:[%s2035_s23 + $0x2c] ss:$16 sps:$4 sm:$0xff]   ;;  %v1436_v42 = vld [vmem:[%s2035_s23 + $0x20] ss:$16 sps:$4 sm:$0xff]   ;;  %v1437_v43 = vld [vmem:[%s2035_s23 + $0x28] ss:$16 sps:$4 sm:$0xff]  }
 0x197   : > { %867 = vmatprep.subr.bf16.mxu1 %v1428_v36  ;;  %827 = vmatpush1.bf16.msra.mxu0 %v1430_v38  ;;  %v1438_v44 = vld [vmem:[%s2035_s23 + $0x44] ss:$16 sps:$4 sm:$0xff]   ;;  %v1440_v45 = vld [vmem:[%s2035_s23 + $0x4c] ss:$16 sps:$4 sm:$0xff]   ;;  %v1442_v46 = vld [vmem:[%s2035_s23 + $0x40] ss:$16 sps:$4 sm:$0xff]  }
 0x198   : > { %868 = vmatpush1.bf16.msra.mxu1 %v1431_v39  ;;  %828 = vmatprep.subr.bf16.mxu0 %v1432_v40  ;;  %v1443_v47 = vld [vmem:[%s2035_s23 + $0x48] ss:$16 sps:$4 sm:$0xff]   ;;  %v1444_v48 = vld [vmem:[%s2035_s23 + $0x64] ss:$16 sps:$4 sm:$0xff]   ;;  %v1446_v49 = vld [vmem:[%s2035_s23 + $0x6c] ss:$16 sps:$4 sm:$0xff]  }
 0x199   : > { %869 = vmatprep.subr.bf16.mxu1 %v1434_v41  ;;  %v1448_v50 = vld [vmem:[%s2035_s23 + $0x60] ss:$16 sps:$4 sm:$0xff]   ;;  %v1449_v51 = vld [vmem:[%s2035_s23 + $0x68] ss:$16 sps:$4 sm:$0xff]   ;;  %v1450_v52 = vld [vmem:[%s2035_s23 + $0x84] ss:$16 sps:$4 sm:$0xff]  }
 0x19a   : > { %v1452_v53 = vld [vmem:[%s2035_s23 + $0x8c] ss:$16 sps:$4 sm:$0xff]   ;;  %v1454_v54 = vld [vmem:[%s2035_s23 + $0x80] ss:$16 sps:$4 sm:$0xff]   ;;  %v1455_v55 = vld [vmem:[%s2035_s23 + $0x88] ss:$16 sps:$4 sm:$0xff]  }
 0x19b   : > { %829 = vmatpush1.bf16.msra.mxu0 %v1436_v42  ;;  %v1456_v56 = vld [vmem:[%s2035_s23 + $0xa4] ss:$16 sps:$4 sm:$0xff]   ;;  %v1458_v57 = vld [vmem:[%s2035_s23 + $0xac] ss:$16 sps:$4 sm:$0xff]   ;;  %v1460_v58 = vld [vmem:[%s2035_s23 + $0xa0] ss:$16 sps:$4 sm:$0xff]  }
 0x19c   : > { %870 = vmatpush1.bf16.msra.mxu1 %v1437_v43  ;;  %830 = vmatprep.subr.bf16.mxu0 %v1438_v44  ;;  %v1461_v59 = vld [vmem:[%s2035_s23 + $0xa8] ss:$16 sps:$4 sm:$0xff]   ;;  %v1462_v60 = vld [vmem:[%s2035_s23 + $0xc4] ss:$16 sps:$4 sm:$0xff]   ;;  %v1464_v61 = vld [vmem:[%s2035_s23 + $0xcc] ss:$16 sps:$4 sm:$0xff]  }
 0x19d   : > { %871 = vmatprep.subr.bf16.mxu1 %v1440_v45  ;;  %v1466_v62 = vld [vmem:[%s2035_s23 + $0xc0] ss:$16 sps:$4 sm:$0xff]   ;;  %v1467_v63 = vld [vmem:[%s2035_s23 + $0xc8] ss:$16 sps:$4 sm:$0xff]   ;;  %v1468_v0 = vld [vmem:[%s2035_s23 + $0xe4] ss:$16 sps:$4 sm:$0xff]  }
 0x19e   : > { %v1470_v1 = vld [vmem:[%s2035_s23 + $0xec] ss:$16 sps:$4 sm:$0xff]   ;;  %v1472_v2 = vld [vmem:[%s2035_s23 + $0xe0] ss:$16 sps:$4 sm:$0xff]   ;;  %v1473_v3 = vld [vmem:[%s2035_s23 + $0xe8] ss:$16 sps:$4 sm:$0xff]  }
 0x19f   : > { %831 = vmatpush1.bf16.msra.mxu0 %v1442_v46  ;;  %v610_v4 = vld [vmem:[#allocation2] sm:$0x1]  ;;  %v807_v7 = vshrl.u32 %v806_v6, 7  ;;  %v644_v10 = vld [vmem:[%s379_s17] sm:$0xf]  ;;  %vm939_vm3 = vcmp.lt.s32.totalorder %v806_v6, 512 }
 0x1a0   : > { %872 = vmatpush1.bf16.msra.mxu1 %v1443_v47  ;;  %832 = vmatprep.subr.bf16.mxu0 %v1444_v48  ;;  %v611_v5 = vpack.c.bf16 %v610_v4, %v610_v4  ;;  %v1751_v12 = vmov 1966171168   ;;  %v942_v46 = vld [vmem:[#allocation3] sm:$0x1]  ;;  %vm990_vm4 = vcmask 0   ;;  %p1225_p10 = scmp.ne.s32.totalorder %s1846_s0, 3 }
 0x1a1   : > { %873 = vmatprep.subr.bf16.mxu1 %v1446_v49  ;;  %v808_v8 = vsub.s32 0, %v807_v7  ;;  %v816_v9 = vsub.s32 2, %v807_v7  ;;  %v812_v11 = vsub.s32 1, %v807_v7  ;;  %v915_v13 = vunpack.c.l.s4 %v1751_v12 }
 0x1a2   : > { %v820_v14 = vsub.s32 3, %v807_v7 }
 0x1a3   : > { %833 = vmatpush1.bf16.msra.mxu0 %v1448_v50  ;;  %v809_v15 = vrot.slane %v644_v10, %v808_v8  ;;  %v817_v16 = vrot.slane %v644_v10, %v816_v9  ;;  %v813_v17 = vrot.slane %v644_v10, %v812_v11  ;;  %v916_v18 = vunpack.c.0.s8 %v915_v13  ;;  %v954_v9 = vld [vmem:[#allocation4] sm:$0x1] }
 0x1a4   : > { %874 = vmatpush1.bf16.msra.mxu1 %v1449_v51  ;;  %834 = vmatprep.subr.bf16.mxu0 %v1450_v52  ;;  %v821_v19 = vrot.slane %v644_v10, %v820_v14 }
 0x1a5   : > { %875 = vmatprep.subr.bf16.mxu1 %v1452_v53  ;;  %v919_v27 = vsub.s32 %v916_v18, %v807_v7 }
 0x1a7   : > { %835 = vmatpush1.bf16.msra.mxu0 %v1454_v54 }
 0x1a8   : > { %876 = vmatpush1.bf16.msra.mxu1 %v1455_v55  ;;  %836 = vmatprep.subr.bf16.mxu0 %v1456_v56 }
 0x1a9   : > { %877 = vmatprep.subr.bf16.mxu1 %v1458_v57 }
 0x1ab   : > { %837 = vmatpush1.bf16.msra.mxu0 %v1460_v58 }
 0x1ac   : > { %878 = vmatpush1.bf16.msra.mxu1 %v1461_v59  ;;  %838 = vmatprep.subr.bf16.mxu0 %v1462_v60 }
 0x1ad   : > { %879 = vmatprep.subr.bf16.mxu1 %v1464_v61 }
 0x1af   : > { %839 = vmatpush1.bf16.msra.mxu0 %v1466_v62 }
 0x1b0   : > { %880 = vmatpush1.bf16.msra.mxu1 %v1467_v63  ;;  %840 = vmatprep.subr.bf16.mxu0 %v1468_v0 }
 0x1b1   : > { %881 = vmatprep.subr.bf16.mxu1 %v1470_v1 }
 0x1b3   : > { %841 = vmatpush1.bf16.msra.mxu0 %v1472_v2 }
 0x1b4   : > { %882 = vmatpush1.bf16.msra.mxu1 %v1473_v3 }
 0x1b6   : > { %859 = vmatmul.mubr.bf16.vlgmr.msra.gmra.mrb[0].mxu0 %v611_v5 }
 0x1b7   : > { %900 = vmatmul.mubr.bf16.vlgmr.msra.gmra.mrb[0].mxu1 %v611_v5 }
 0x289   : > { %v860_v20 = vpop.f32.mrb[0].mxu0 }
 0x28a   : > { %v901_v21 = vpop.f32.mrb[0].mxu1  ;;  %v861_v22 = vadd.f32 %v860_v20, %v809_v15  ;;  %v862_v24 = vpop.f32.mrb[1].mxu0 }
 0x28b   : > { %v902_v23 = vadd.f32 %v901_v21, %v817_v16  ;;  %v903_v25 = vpop.f32.mrb[1].mxu1  ;;  %v863_v26 = vadd.f32 %v862_v24, %v813_v17  ;;  %v864_v29 = vpop.f32.mrb[2].mxu0 }
 0x28c   : > { %v904_v28 = vadd.f32 %v903_v25, %v821_v19  ;;  %v905_v30 = vpop.f32.mrb[2].mxu1  ;;  %v865_v31 = vpop.f32.mrb[3].mxu0  ;;  %v944_v33 = vsel %vm943_vm2, %v861_v22, -inf }
 0x28d   : > { %v906_v32 = vpop.f32.mrb[3].mxu1  ;;  %v946_v34 = vsel %vm943_vm2, %v902_v23, -inf  ;;  %v912_v35 = vcombine.low %v861_v22, %v863_v26  ;;  %v945_v37 = vsel %vm943_vm2, %v863_v26, -inf }
 0x28e   : > { %v913_v36 = vcombine.low %v902_v23, %v904_v28  ;;  %v947_v38 = vsel %vm943_vm2, %v904_v28, -inf  ;;  %v948_v39 = vmax.f32 %v944_v33, %v945_v37 }
 0x28f   : > { %v949_v40 = vmax.f32 %v946_v34, %v947_v38  ;;  %v920_v41 = vrot.slane %v912_v35, %v919_v27 }
 0x290   : > { %v927_v42 = vrot.slane %v913_v36, %v919_v27 }
 0x291   : > { %v950_v43 = vmax.f32 %v948_v39, %v949_v40 }
 0x292   : > { %v928_v44 = vcombine.low %v920_v41, %v927_v42 }
 0x293   : > { %951 = vmax.xlane.f32.xlu0 %v950_v43 }
 0x294   : > { %v935_v45 = vrot.slane %v928_v44, %v919_v27 }
 0x296   : > { %941 = vst.msk [vmem:[%s2049_s27] sm:$0xf] %vm939_vm3, %v935_v45 }
 0x320   : > { %v952_v47 = vpop.xlane.xlu0 %951 }
 0x321   : > { %v953_v48 = vmax.f32 %v942_v46, %v952_v47 }
 0x323   : > { %v955_v49 = vsub.f32 %v942_v46, %v953_v48  ;;  %992 = vst.msk [vmem:[#allocation3] sm:$0x1] %vm990_vm4, %v953_v48  ;;  %961 = vperm.xlu0 %1425, %v953_v48  }
 0x325   : > { %v956_v7 = vmul.f32 1.442695, %v955_v49 }
 0x32a   : > { %v997_v15 = vld [vmem:[#allocation3] sm:$0x1] (!%p1225_p10) }
 0x3a2   : > { %v962_v50 = vpop.permute.xlu0 %961 }
 0x3a3   : > { %v967_v51 = vrot.slane %v962_v50, %v808_v8 }
 0x3a5   : > { %v968_v52 = vsub.f32 %v861_v22, %v967_v51  ;;  %v969_v53 = vsub.f32 %v863_v26, %v967_v51  ;;  %v970_v54 = vsub.f32 %v902_v23, %v967_v51  ;;  %v971_v55 = vsub.f32 %v904_v28, %v967_v51 }
 0x3a7   : > { %v972_v56 = vmul.f32 1.442695, %v968_v52  ;;  %v974_v57 = vmul.f32 1.442695, %v969_v53  ;;  %v976_v58 = vmul.f32 1.442695, %v970_v54 }
 0x3a8   : > { %v978_v59 = vmul.f32 1.442695, %v971_v55 }
 0x3a9   : > { %1474 = vpow2.f32 %v972_v56 }
 0x3aa   : > { %1476 = vpow2.f32 %v974_v57 }
 0x3ab   : > { %1478 = vpow2.f32 %v976_v58 }
 0x3ac   : > { %1480 = vpow2.f32 %v978_v59 }
 0x3ad   : > { %1482 = vpow2.f32 %v956_v7 }
 0x3b3   : > { %v1475_v60 = vpop.eup %1474 }
 0x3b4   : > { %v1477_v61 = vpop.eup %1476  ;;  %v980_v62 = vsel %vm943_vm2, %v1475_v60, 0.0 }
 0x3b5   : > { %v1479_v63 = vpop.eup %1478  ;;  %v981_v0 = vsel %vm943_vm2, %v1477_v61, 0.0 }
 0x3b6   : > { %v1481_v1 = vpop.eup %1480  ;;  %v982_v2 = vadd.f32 %v981_v0, %v980_v62  ;;  %v983_v3 = vsel %vm943_vm2, %v1479_v63, 0.0 }
 0x3b7   : > { %v985_v5 = vsel %vm943_vm2, %v1481_v1, 0.0  ;;  %v1483_v8 = vpop.eup %1482 }
 0x3b8   : > { %v984_v4 = vadd.f32 %v983_v3, %v982_v2  ;;  %v958_v10 = vmul.f32 %v1483_v8, %v954_v9 }
 0x3ba   : > { %v986_v6 = vadd.f32 %v985_v5, %v984_v4 }
 0x3bc   : > { %987 = vadd.xlane.f32.xlu1 %v986_v6 }
 0x446   : > { %996 = sbr.rel (%p1225_p10) target bundleno = 1124 (0x464), region = 64 }
 0x449   : > { %v988_v11 = vpop.xlane.xlu1 %987 }
 0x44a   : > { %v989_v12 = vadd.f32 %v988_v11, %v958_v10 }
 0x44c   : > { %991 = vst.msk [vmem:[#allocation4] sm:$0x1] %vm990_vm4, %v989_v12 }
 0x453   : > { %v998_v13 = vld [vmem:[#allocation4] sm:$0x1] }
 0x454   : > { %1484 = vlog2.f32 %v998_v13 }
 0x45e   : > { %v1485_v14 = vpop.eup %1484 }
 0x45f   : > { %v1000_v16 = vmul.f32 0.6931472, %v1485_v14 }
 0x461   : > { %v1001_v17 = vadd.f32 %v1000_v16, %v997_v15 }
 0x463   : > { %1002 = vst.msk [vmem:[#allocation14] sm:$0x1] %vm990_vm4, %v1001_v17 }
 0x464 PF: > { %s1752_s29 = smov [#allocation14]   ;;  %s1236_s22 = sshll.u32 %s1846_s0, 6 }
 0x465   : > { %s1029_s15 = sshll.u32 %s1752_s29, 4  ;;  %s2113_s1 = scalar_lea.hbm %s2212_s7, %s1236_s22  ;;  %s1030_s15 = int_to_ptr.vmem [resolvable:$true] %s1029_s15 }
 0x466   : > { %s1584_s16 = scalar_lea.vmem %s1030_s15, 16  ;;  %p2258_p13 = scmp.eq.s32.totalorder %s1846_s0, 3 }
 0x467   : > { %p1585_p4 = scmp.ne.s32.totalorder %s1030_s15, %s1584_s16  ;;  %s1590_s10 = scalar_lea.vmem %s1030_s15, 32 }
 0x468   : > { %p1591_p8 = scmp.lt.s32.totalorder %s1030_s15, %s1030_s15  ;;  %p1592_p0 = scmp.lt.s32.totalorder %s1590_s10, %s1584_s16 }
 0x469   : > { %p1586_p12 = pnand %p1585_p4, %p2258_p13 }
 0x46a   : > { %p1593_p6 = por %p1592_p0, %p1591_p8 }
 0x46b   : > { %p1587_p11 = pneg %p1586_p12 }
 0x46d   : > { %p1594_p5 = pnand %p1593_p6, %p1587_p11 }
 0x46f   : > { %1597 = shalt.err (!%p1594_p5)
}
 0x470   : > { %s1598_s19 = scalar_lea.hbm %s2213_s8, 16  ;;  %p2259_p7 = pmov %p2258_p13 }
 0x471   : > { %p1599_p1 = scmp.ne.s32.totalorder %s2213_s8, %s1598_s19  ;;  %p1604_p9 = scmp.lt.u32.totalorder %s1598_s19, %s2213_s8 }
 0x473   : > { %p1600_p3 = pnand %p1599_p1, %p2259_p7 }
 0x475   : > { %p1601_p2 = pneg %p1600_p3 }
 0x477   : > { %p1606_p10 = pnand %p1604_p9, %p1601_p2 }
 0x479   : > { %1609 = shalt.err (!%p1606_p10)
}
 0x47a   : > { %p2260_p4 = pmov %p2259_p7  ;;  %s1018_s29 = sshll.u32 %s2049_s27, 4  ;;  %s2134_s29 = int_to_ptr.vmem [resolvable:$true] %s1018_s29 }
 0x47b   : > { %s1753_s22 = smov [#allocation16]   ;;  %s1004_s30 = scalar_lea.sflag [#allocation9], %s2032_s9 }
 0x47c   : > { %1305 = dma.vmem_to_hbm [thread:$0]  (%p2260_p4), %s1030_s15, 16, %s2213_s8, [#allocation15]  }
 0x47d   : > { %s2136_s23 = sshll.u32 %s1753_s22, 4  ;;  %s1610_s16 = scalar_lea.vmem %s2134_s29, 64  ;;  %s1041_s23 = int_to_ptr.vmem [resolvable:$true] %s2136_s23 }
 0x47e   : > { %p1611_p13 = scmp.ne.s32.totalorder %s2134_s29, %s1610_s16  ;;  %p2261_p12 = scmp.ne.s32.totalorder %s2240_s13, 0 }
 0x47f   : > { %s1754_s10 = smov [#allocation13]  }
 0x480   : > { %p1612_p11 = pnand %p1611_p13, %p2261_p12  ;;  %s1614_s17 = sshll.u32 %s1754_s10, 4  ;;  %s1615_s17 = int_to_ptr.vmem [resolvable:$false] %s1614_s17 }
 0x481   : > { %s1616_s12 = scalar_lea.vmem %s1615_s17, 128  ;;  %p1617_p0 = scmp.lt.s32.totalorder %s2134_s29, %s1615_s17 }
 0x482   : > { %p1613_p8 = pneg %p1612_p11  ;;  %p1618_p6 = scmp.lt.s32.totalorder %s1616_s12, %s1610_s16 }
 0x484   : > { %p1619_p5 = por %p1618_p6, %p1617_p0 }
 0x486   : > { %p1620_p1 = pnand %p1619_p5, %p1613_p8 }
 0x488   : > { %1623 = shalt.err (!%p1620_p1)
}
 0x489   : > { %s1624_s9 = scalar_lea.hbm %s2113_s1, 64  ;;  %s1628_s19 = scalar_lea.hbm %s2212_s7, 256 }
 0x48a   : > { %p1625_p7 = scmp.ne.s32.totalorder %s2113_s1, %s1624_s9  ;;  %p1629_p9 = scmp.lt.u32.totalorder %s2113_s1, %s2212_s7 }
 0x48b   : > { %p1630_p10 = scmp.lt.u32.totalorder %s1628_s19, %s1624_s9  ;;  %p1632_p13 = scmp.lt.u32.totalorder %s1624_s9, %s2113_s1 }
 0x48c   : > { %p1626_p3 = pnand %p1625_p7, %p2261_p12 }
 0x48d   : > { %p1631_p4 = por %p1630_p10, %p1629_p9 }
 0x48e   : > { %p1627_p2 = pneg %p1626_p3 }
 0x48f   : > { %p1633_p11 = por %p1632_p13, %p1631_p4 }
 0x491   : > { %p1634_p8 = pnand %p1633_p11, %p1627_p2 }
 0x493   : > { %1637 = shalt.err (!%p1634_p8)
}
 0x494   : > { %1303 = dma.vmem_to_hbm [thread:$0]  (%p2261_p12), %s2134_s29, 64, %s2113_s1, %s1004_s30  }
 0x495   : > { %s1638_s18 = scalar_lea.vmem %s1041_s23, 16  ;;  %p2262_p6 = scmp.eq.s32.totalorder %s1846_s0, 3 }
 0x496   : > { %p1639_p0 = scmp.ne.s32.totalorder %s1041_s23, %s1638_s18  ;;  %s1644_s28 = scalar_lea.vmem %s1041_s23, 32 }
 0x497   : > { %p1645_p7 = scmp.lt.s32.totalorder %s1041_s23, %s1041_s23  ;;  %p1646_p3 = scmp.lt.s32.totalorder %s1644_s28, %s1638_s18 }
 0x498   : > { %p1640_p5 = pnand %p1639_p0, %p2262_p6 }
 0x499   : > { %p1647_p9 = por %p1646_p3, %p1645_p7 }
 0x49a   : > { %p1641_p1 = pneg %p1640_p5 }
 0x49c   : > { %p1648_p10 = pnand %p1647_p9, %p1641_p1 }
 0x49e   : > { %1651 = shalt.err (!%p1648_p10)
}
 0x49f   : > { %s2263_s13 = sld [smem:[#allocation29_spill]]  ;;  %p2264_p2 = pmov %p2262_p6 }
 0x4a5   : > { %s1652_s22 = scalar_lea.hbm %s2263_s13, 16 }
 0x4a6   : > { %p1653_p12 = scmp.ne.s32.totalorder %s2263_s13, %s1652_s22  ;;  %p1658_p11 = scmp.lt.u32.totalorder %s1652_s22, %s2263_s13 }
 0x4a8   : > { %p1654_p4 = pnand %p1653_p12, %p2264_p2 }
 0x4aa   : > { %p1655_p13 = pneg %p1654_p4 }
 0x4ac   : > { %p1660_p8 = pnand %p1658_p11, %p1655_p13 }
 0x4ae   : > { %1663 = shalt.err (!%p1660_p8)
}
 0x4af   : > { %p2265_p0 = pmov %p2264_p2 }
 0x4b1   : > { %1307 = dma.vmem_to_hbm [thread:$0]  (%p2265_p0), %s1041_s23, 16, %s2263_s13, [#allocation15]  }
 0x4b2   : > { %p2266_p6 = pmov %p2265_p0 }
 0x4b3   : > { %p2267_p5 = pmov %p2265_p0 }
 0x4b4   : > { %1707 = dma.done.wait (%p2266_p6), [#allocation15], 32  }
 0x4b5   : > { %1709 = vsyncadd (%p2267_p5), [#allocation15], 4294967264 }
 0x4b6 PF: > { %s2268_s12 = sld [smem:[#allocation23_spill]]  ;;  %s2269_s9 = sld [smem:[#allocation27_spill]] }
 0x4b7   : > { %p1335_p1 = scmp.ge.s32.totalorder %s1736_s24, 2 }
 0x4bc   : > { %s1060_s27 = sand.u32 1, %s2268_s12   ;;  %p2270_p7 = scmp.ne.s32.totalorder %s2269_s9, 0 }
 0x4bd   : > { %s1061_s15 = scalar_lea.sflag [#allocation9], %s1060_s27 }
 0x4be   : > { %p1325_p3 = pnand %p1335_p1, %p2270_p7 }
 0x4c0   : > { %1711 = dma.done.wait (!%p1325_p3), %s1061_s15, 64  }
 0x4c1   : > { %1713 = vsyncadd (!%p1325_p3), %s1061_s15, 4294967232  ;;  %s2271_s24 = sld [smem:[#allocation25_spill]]  ;;  %s2272_s23 = sld [smem:[#allocation26_spill]] }
 0x4c2   : > { %s2273_s22 = sld [smem:[#allocation24_spill]]  ;;  %s2274_s19 = smov %s1720_s20 }
 0x4c3   : > { %s2275_s20 = smov %s1724_s21 }
 0x4c7   : > { %p27_p9 = scmp.ge.s32.totalorder %s2271_s24, 6   ;;  %s2276_s21 = smov %s2272_s23 }
 0x4c8   : > { %s2200_s23 = smov 0  }
 0x4c9   :  { %29 = sbr.rel (!%p27_p9) target bundleno = 20 (0x14), region = 125 }
 0x4d0   :  { %1066 = vsyncpa [#allocation8], 1 }
 0x4d1   :  { %1068 = vsyncpa [#allocation8 + $0x1], 1 }
 0x4d2   :  { %1069 = vsyncpa [#allocation11], 1 }
 0x4d3   :  { %1070 = vsyncpa [#allocation9], 1 }
 0x4d4   :  { %1072 = vsyncpa [#allocation9 + $0x1], 1 }
 0x4d5   :  { %1073 = vsyncpa [#allocation15], 1 }

</bundles_post_ra>
